<compile_context>
chip_gen: v6e
topology: v6e:2x2x1
jax: 0.10.0
libtpu: 0.0.40
codegen_flags: <defaults>
</compile_context>

<pallas_src>
import functools

import jax
import jax.numpy as jnp
from jax.experimental import pallas as pl
from jax.experimental.pallas import tpu as pltpu

_NEG = -1e30  # softmax-neutral fill for padded class lanes (finite -> no NaNs)


def _log_softmax(x):
    m = jnp.max(x, axis=-1, keepdims=True)
    s = x - m
    return s - jnp.log(jnp.sum(jnp.exp(s), axis=-1, keepdims=True))


# ----------------------------------------------------------------------------
# Specialized kernel for distillation_type == "none": base CE only.
# ----------------------------------------------------------------------------
def _base_ce_kernel(labels_ref, outputs_ref, o_ref, *, batch):
    outputs = outputs_ref[...].astype(jnp.float32)
    labels = labels_ref[...]                                     # [B, 1] int32
    B, Cp = outputs.shape
    col = jax.lax.broadcasted_iota(jnp.int32, (B, Cp), 1)
    mask = (col == labels).astype(jnp.float32)
    o_ref[0, 0] = -jnp.sum(mask * _log_softmax(outputs)) / float(batch)


# ----------------------------------------------------------------------------
# Fused kernel: K-tiled teacher matmul (bf16 -> f32 acc) + distillation loss.
# ----------------------------------------------------------------------------
def _fused_distill_kernel(labels_ref, outputs_ref, kd_ref, x_ref, w_ref, b_ref,
                          o_ref, acc_ref, *,
                          distillation_type, alpha, tau, batch, n_classes):
    k = pl.program_id(0)

    @pl.when(k == 0)
    def _():
        acc_ref[...] = jnp.zeros_like(acc_ref)

    # Teacher matmul partial product for this K tile (bf16 in, f32 accumulate).
    acc_ref[...] += jnp.dot(x_ref[...], w_ref[...],
                            preferred_element_type=jnp.float32)

    @pl.when(k == pl.num_programs(0) - 1)
    def _():
        teacher = acc_ref[...] + b_ref[...].astype(jnp.float32)  # [B, Cp] f32
        outputs = outputs_ref[...].astype(jnp.float32)
        kd = kd_ref[...].astype(jnp.float32)
        labels = labels_ref[...]                                 # [B, 1] int32
        B, Cp = outputs.shape
        col = jax.lax.broadcasted_iota(jnp.int32, (B, Cp), 1)

        # base_criterion: cross-entropy, mean reduction over the batch.
        lab_mask = (col == labels).astype(jnp.float32)
        base_loss = -jnp.sum(lab_mask * _log_softmax(outputs)) / float(batch)

        if distillation_type == "soft":
            inv_t = 1.0 / tau
            # Teacher softmax + log-softmax from a single exp pass.
            t = teacher * inv_t
            t_max = jnp.max(t, axis=-1, keepdims=True)
            t_sh = t - t_max
            t_exp = jnp.exp(t_sh)
            t_z = jnp.sum(t_exp, axis=-1, keepdims=True)
            p_t = t_exp / t_z
            t_log = t_sh - jnp.log(t_z)
            s_log = _log_softmax(kd * inv_t)
            # F.kl_div(s_log, t_log, reduction='sum', log_target=True)
            #   = sum( exp(t_log) * (t_log - s_log) )
            kl = jnp.sum(p_t * (t_log - s_log))
            distill = kl * (tau * tau) / float(batch * n_classes)
        else:  # "hard"
            # F.cross_entropy(kd, teacher.argmax(dim=1)) with PyTorch
            # first-max tie-breaking; padded lanes are -1e30 so never win.
            t_max = jnp.max(teacher, axis=-1, keepdims=True)
            masked = jnp.where(teacher == t_max, col, Cp)
            first = jnp.min(masked, axis=-1, keepdims=True)
            hard_mask = (col == first).astype(jnp.float32)
            distill = -jnp.sum(hard_mask * _log_softmax(kd)) / float(batch)

        o_ref[0, 0] = base_loss * (1.0 - alpha) + distill * alpha


# ----------------------------------------------------------------------------
# Python wrapper mirroring DistillationLoss.forward
# ----------------------------------------------------------------------------
def _pad_classes(x, cp, fill):
    c = x.shape[-1]
    if cp == c:
        return x
    return jnp.pad(x, ((0, 0), (0, cp - c)), constant_values=fill)


def distillation_loss(inputs, outputs, labels, teacher_w, teacher_b, *,
                      distillation_type="soft", alpha=0.5, tau=1.0):
    assert distillation_type in ("none", "soft", "hard")

    outputs_kd = None
    if isinstance(outputs, (tuple, list)):
        outputs, outputs_kd = outputs

    B, C = outputs.shape
    Cp = max(128, pl.cdiv(C, 128) * 128)            # lane-dense class axis
    labels2d = labels.astype(jnp.int32).reshape(B, 1)
    outputs_p = _pad_classes(outputs, Cp, _NEG)

    if distillation_type == "none":
        # Specialized path: only (labels, outputs) go through the kernel.
        loss = pl.pallas_call(
            functools.partial(_base_ce_kernel, batch=B),
            out_shape=jax.ShapeDtypeStruct((1, 1), jnp.float32),
            out_specs=pl.BlockSpec(memory_space=pltpu.SMEM),
        )(labels2d, outputs_p)
        return loss[0, 0]

    if outputs_kd is None:
        raise ValueError(
            "When knowledge distillation is enabled, the model is expected "
            "to return a Tuple[Tensor, Tensor]")

    kd_p = _pad_classes(outputs_kd, Cp, _NEG)

    # Teacher (synthetic linear classifier), fused into the loss kernel.
    x_flat = inputs.reshape(B, -1).astype(jnp.float32)
    K = x_flat.shape[1]
    tk = 512                                        # K tile size
    Kp = pl.cdiv(K, tk) * tk
    if Kp != K:
        x_flat = jnp.pad(x_flat, ((0, 0), (0, Kp - K)))
        teacher_w = jnp.pad(teacher_w, ((0, Kp - K), (0, 0)))
    w_p = _pad_classes(teacher_w, Cp, 0.0)
    b_p = _pad_classes(teacher_b.reshape(1, -1).astype(jnp.float32), Cp, _NEG)

    # bf16 MXU inputs, f32 accumulation (teacher logits stay f32 so the
    # hard-path exact-equality argmax remains well defined).
    x_bf16 = x_flat.astype(jnp.bfloat16)
    w_bf16 = w_p.astype(jnp.bfloat16)

    n_k = Kp // tk
    # VMEM budget: resident [B,Cp] logits + f32 accumulator + bias + labels,
    # plus double-buffered bf16 x / W tiles; 2x margin, capped at 32 MiB.
    resident = (2 * B * Cp * 4) + (B * Cp * 4) + (Cp * 4) + (B * 4)
    tiles = 2 * (B * tk + tk * Cp) * 2
    vmem_limit = int(min(max(2 * (resident + tiles), 4 * 1024 * 1024),
                         32 * 1024 * 1024))

    kernel = functools.partial(
        _fused_distill_kernel,
        distillation_type=distillation_type,
        alpha=float(alpha), tau=float(tau),
        batch=B, n_classes=C)

    # NOTE: for very large num_classes one would also tile the class axis
    # ("parallel" across v7x TensorCores) with an online-softmax finalize;
    # not needed at DeiT-scale class counts (<= a few thousand lanes).
    loss = pl.pallas_call(
        kernel,
        out_shape=jax.ShapeDtypeStruct((1, 1), jnp.float32),
        grid=(n_k,),
        in_specs=[
            pl.BlockSpec((B, 1), lambda k: (0, 0)),     # labels (resident)
            pl.BlockSpec((B, Cp), lambda k: (0, 0)),    # outputs (resident)
            pl.BlockSpec((B, Cp), lambda k: (0, 0)),    # kd (resident)
            pl.BlockSpec((B, tk), lambda k: (0, k)),    # x K-tile (bf16)
            pl.BlockSpec((tk, Cp), lambda k: (k, 0)),   # W K-tile (bf16)
            pl.BlockSpec((1, Cp), lambda k: (0, 0)),    # bias (resident)
        ],
        out_specs=pl.BlockSpec((1, 1), lambda k: (0, 0),
                               memory_space=pltpu.SMEM),
        scratch_shapes=[pltpu.VMEM((B, Cp), jnp.float32)],
        compiler_params=pltpu.CompilerParams(
            dimension_semantics=("arbitrary",),
            vmem_limit_bytes=vmem_limit),
    )(labels2d, outputs_p, kd_p, x_bf16, w_bf16, b_p)
    return loss[0, 0]


# ----------------------------------------------------------------------------
# Pure-JAX reference (teacher matmul uses the same bf16 cast as the kernel).
# ----------------------------------------------------------------------------
def _reference(inputs, outputs_tuple, labels, teacher_w, teacher_b,
               distillation_type, alpha, tau):
    outputs, kd = outputs_tuple
    B, C = outputs.shape
    onehot = jax.nn.one_hot(labels, C, dtype=jnp.float32)
    base = -jnp.mean(jnp.sum(onehot * jax.nn.log_softmax(outputs, axis=1), axis=1))
    if distillation_type == "none":
        return base
    x_flat = inputs.reshape(B, -1)
    teacher = jnp.dot(x_flat.astype(jnp.bfloat16), teacher_w.astype(jnp.bfloat16),
                      preferred_element_type=jnp.float32) + teacher_b
    if distillation_type == "soft":
        T = tau
        s_log = jax.nn.log_softmax(kd / T, axis=1)
        t_log = jax.nn.log_softmax(teacher / T, axis=1)
        dist = jnp.sum(jnp.exp(t_log) * (t_log - s_log)) * (T * T) / (B * C)
    else:
        t_idx = jnp.argmax(teacher, axis=1)
        dist = -jnp.mean(
            jnp.take_along_axis(jax.nn.log_softmax(kd, axis=1),
                                t_idx[:, None], axis=1))
    return base * (1 - alpha) + dist * alpha


if __name__ == "__main__":
    key = jax.random.PRNGKey(0)
    k_in, k_out, k_kd, k_lab, k_w, k_b = jax.random.split(key, 6)

    B, C_in, H, W = 8, 4, 16, 16
    num_classes = 128
    feat = C_in * H * W  # 1024  -> two K tiles of 512

    inputs = jax.random.normal(k_in, (B, C_in, H, W), dtype=jnp.float32)
    outputs = jax.random.normal(k_out, (B, num_classes), dtype=jnp.float32)
    outputs_kd = jax.random.normal(k_kd, (B, num_classes), dtype=jnp.float32)
    labels = jax.random.randint(k_lab, (B,), 0, num_classes)

    # Deterministic synthetic teacher parameters.
    teacher_w = jax.random.normal(k_w, (feat, num_classes), dtype=jnp.float32) * 0.02
    teacher_b = jax.random.normal(k_b, (1, num_classes), dtype=jnp.float32) * 0.02

    alpha, tau = 0.5, 2.0

    ok = True
    for dt in ("soft", "hard", "none"):
        loss = distillation_loss(
            inputs, (outputs, outputs_kd), labels, teacher_w, teacher_b,
            distillation_type=dt, alpha=alpha, tau=tau)
        loss = jax.block_until_ready(loss)
        ref = _reference(inputs, (outputs, outputs_kd), labels,
                         teacher_w, teacher_b, dt, alpha, tau)
        if not jnp.allclose(loss, ref, rtol=2e-3, atol=2e-3):
            ok = False
            print(f"mismatch for '{dt}': kernel={loss} ref={ref}")

    if ok:
        print("KERNEL_OK")
</pallas_src>

<mosaic_0001>
module attributes {stable_mosaic.version = 11 : i64} {
  func.func @_fused_distill_kernel(%arg0: i32, %arg1: memref<8x1xi32, #tpu.memory_space<vmem>>, %arg2: memref<8x128xf32, #tpu.memory_space<vmem>>, %arg3: memref<8x128xf32, #tpu.memory_space<vmem>>, %arg4: memref<8x512xbf16, #tpu.memory_space<vmem>>, %arg5: memref<512x128xbf16, #tpu.memory_space<vmem>>, %arg6: memref<1x128xf32, #tpu.memory_space<vmem>>, %arg7: memref<1x1xf32, #tpu.memory_space<smem>>, %arg8: memref<8x128xf32, #tpu.memory_space<vmem>>) attributes {dimension_semantics = [#tpu.dimension_semantics<arbitrary>], iteration_bounds = array<i64: 2>, scalar_prefetch = 0 : i64, scratch_operands = 1 : i64, tpu.core_type = #tpu.core_type<tc>, window_params = [{pipeline_mode = #tpu.pipeline_mode<synchronous>, transform_indices = @transform_0, window_bounds = array<i64: 8, 1>}, {pipeline_mode = #tpu.pipeline_mode<synchronous>, transform_indices = @transform_1, window_bounds = array<i64: 8, 128>}, {pipeline_mode = #tpu.pipeline_mode<synchronous>, transform_indices = @transform_2, window_bounds = array<i64: 8, 128>}, {transform_indices = @transform_3, window_bounds = array<i64: 8, 512>}, {transform_indices = @transform_4, window_bounds = array<i64: 512, 128>}, {pipeline_mode = #tpu.pipeline_mode<synchronous>, transform_indices = @transform_5, window_bounds = array<i64: 1, 128>}, {transform_indices = @transform_6, window_bounds = array<i64: 1, 1>}]} {
    %c0_i32 = arith.constant 0 : i32
    %0 = arith.cmpi eq, %arg0, %c0_i32 : i32
    %1 = arith.extui %0 : i1 to i32
    %c0_i32_0 = arith.constant 0 : i32
    %2 = arith.cmpi ne, %1, %c0_i32_0 : i32
    scf.if %2 {
      %cst_9 = arith.constant 0.000000e+00 : f32
      %12 = vector.broadcast %cst_9 : f32 to vector<8x128xf32>
      %c0_10 = arith.constant 0 : index
      %c0_11 = arith.constant 0 : index
      %13 = vector.load %arg8[%c0_10, %c0_11] : memref<8x128xf32, #tpu.memory_space<vmem>>, vector<8x128xf32>
      tpu.vector_store %arg8[%c0_10, %c0_11], %12 {strides = array<i32>} : memref<8x128xf32, #tpu.memory_space<vmem>>, vector<8x128xf32>,
    } else {
    }
    %c0 = arith.constant 0 : index
    %c0_1 = arith.constant 0 : index
    %3 = vector.load %arg8[%c0, %c0_1] : memref<8x128xf32, #tpu.memory_space<vmem>>, vector<8x128xf32>
    %c0_2 = arith.constant 0 : index
    %c0_3 = arith.constant 0 : index
    %4 = vector.load %arg4[%c0_2, %c0_3] : memref<8x512xbf16, #tpu.memory_space<vmem>>, vector<8x512xbf16>
    %c0_4 = arith.constant 0 : index
    %c0_5 = arith.constant 0 : index
    %5 = vector.load %arg5[%c0_4, %c0_5] : memref<512x128xbf16, #tpu.memory_space<vmem>>, vector<512x128xbf16>
    %cst = arith.constant dense<0.000000e+00> : vector<8x128xf32>
    %6 = tpu.matmul %4, %5, %cst {dimension_numbers = #tpu.dot_dimension_numbers<[1], [0], [0], [1], [0, 0, 1, 1], [], []>} : vector<8x512xbf16>, vector<512x128xbf16>, vector<8x128xf32> -> vector<8x128xf32>
    %7 = arith.addf %3, %6 : vector<8x128xf32>
    %c0_6 = arith.constant 0 : index
    %c0_7 = arith.constant 0 : index
    %8 = vector.load %arg8[%c0_6, %c0_7] : memref<8x128xf32, #tpu.memory_space<vmem>>, vector<8x128xf32>
    tpu.vector_store %arg8[%c0_6, %c0_7], %7 {strides = array<i32>} : memref<8x128xf32, #tpu.memory_space<vmem>>, vector<8x128xf32>,
    %c1_i32 = arith.constant 1 : i32
    %9 = arith.cmpi eq, %arg0, %c1_i32 : i32
    %10 = arith.extui %9 : i1 to i32
    %c0_i32_8 = arith.constant 0 : i32
    %11 = arith.cmpi ne, %10, %c0_i32_8 : i32
    scf.if %11 {
      %c0_9 = arith.constant 0 : index
      %c0_10 = arith.constant 0 : index
      %12 = vector.load %arg8[%c0_9, %c0_10] : memref<8x128xf32, #tpu.memory_space<vmem>>, vector<8x128xf32>
      %c0_11 = arith.constant 0 : index
      %c0_12 = arith.constant 0 : index
      %13 = vector.load %arg6[%c0_11, %c0_12] : memref<1x128xf32, #tpu.memory_space<vmem>>, vector<1x128xf32>
      %14 = vector.broadcast %13 : vector<1x128xf32> to vector<8x128xf32>
      %15 = arith.addf %12, %14 : vector<8x128xf32>
      %c0_13 = arith.constant 0 : index
      %c0_14 = arith.constant 0 : index
      %16 = vector.load %arg2[%c0_13, %c0_14] : memref<8x128xf32, #tpu.memory_space<vmem>>, vector<8x128xf32>
      %c0_15 = arith.constant 0 : index
      %c0_16 = arith.constant 0 : index
      %17 = vector.load %arg3[%c0_15, %c0_16] : memref<8x128xf32, #tpu.memory_space<vmem>>, vector<8x128xf32>
      %c0_17 = arith.constant 0 : index
      %c0_18 = arith.constant 0 : index
      %18 = vector.load %arg1[%c0_17, %c0_18] : memref<8x1xi32, #tpu.memory_space<vmem>>, vector<8x1xi32>
      %19 = tpu.iota {dimensions = array<i32: 1>} : vector<8x128xi32>
      %20 = vector.broadcast %18 : vector<8x1xi32> to vector<8x128xi32>
      %21 = arith.cmpi eq, %19, %20 : vector<8x128xi32>
      %22 = arith.extui %21 : vector<8x128xi1> to vector<8x128xi32>
      %23 = arith.sitofp %22 : vector<8x128xi32> to vector<8x128xf32>
      %cst_19 = arith.constant dense<0xFF800000> : vector<8xf32>
      %24 = vector.multi_reduction <maximumf>, %16, %cst_19 [1] : vector<8x128xf32> to vector<8xf32>
      %25 = vector.shape_cast %24 : vector<8xf32> to vector<8x1xf32>
      %26 = vector.broadcast %25 : vector<8x1xf32> to vector<8x128xf32>
      %27 = arith.subf %16, %26 : vector<8x128xf32>
      %28 = math.exp %27 : vector<8x128xf32>
      %cst_20 = arith.constant dense<0.000000e+00> : vector<8xf32>
      %29 = vector.multi_reduction <add>, %28, %cst_20 [1] : vector<8x128xf32> to vector<8xf32>
      %30 = vector.shape_cast %29 : vector<8xf32> to vector<8x1xf32>
      %31 = math.log %30 : vector<8x1xf32>
      %32 = vector.broadcast %31 : vector<8x1xf32> to vector<8x128xf32>
      %33 = arith.subf %27, %32 : vector<8x128xf32>
      %34 = arith.mulf %23, %33 : vector<8x128xf32>
      %35 = vector.shape_cast %34 : vector<8x128xf32> to vector<1x8x128xf32>
      %cst_21 = arith.constant dense<0.000000e+00> : vector<1xf32>
      %36 = vector.multi_reduction <add>, %35, %cst_21 [1, 2] : vector<1x8x128xf32> to vector<1xf32>
      %37 = vector.shape_cast %36 : vector<1xf32> to vector<1x1x1xf32>
      %38 = vector.extract %37[0, 0, 0] : f32 from vector<1x1x1xf32>
      %cst_22 = arith.constant 0.000000e+00 : f32
      %39 = arith.subf %cst_22, %38 : f32
      %cst_23 = arith.constant 8.000000e+00 : f32
      %40 = arith.divf %39, %cst_23 : f32
      %cst_24 = arith.constant 5.000000e-01 : f32
      %41 = vector.broadcast %cst_24 : f32 to vector<8x128xf32>
      %42 = arith.mulf %15, %41 : vector<8x128xf32>
      %cst_25 = arith.constant dense<0xFF800000> : vector<8xf32>
      %43 = vector.multi_reduction <maximumf>, %42, %cst_25 [1] : vector<8x128xf32> to vector<8xf32>
      %44 = vector.shape_cast %43 : vector<8xf32> to vector<8x1xf32>
      %45 = vector.broadcast %44 : vector<8x1xf32> to vector<8x128xf32>
      %46 = arith.subf %42, %45 : vector<8x128xf32>
      %47 = math.exp %46 : vector<8x128xf32>
      %cst_26 = arith.constant dense<0.000000e+00> : vector<8xf32>
      %48 = vector.multi_reduction <add>, %47, %cst_26 [1] : vector<8x128xf32> to vector<8xf32>
      %49 = vector.shape_cast %48 : vector<8xf32> to vector<8x1xf32>
      %50 = vector.broadcast %49 : vector<8x1xf32> to vector<8x128xf32>
      %51 = arith.divf %47, %50 : vector<8x128xf32>
      %52 = math.log %49 : vector<8x1xf32>
      %53 = vector.broadcast %52 : vector<8x1xf32> to vector<8x128xf32>
      %54 = arith.subf %46, %53 : vector<8x128xf32>
      %cst_27 = arith.constant 5.000000e-01 : f32
      %55 = vector.broadcast %cst_27 : f32 to vector<8x128xf32>
      %56 = arith.mulf %17, %55 : vector<8x128xf32>
      %cst_28 = arith.constant dense<0xFF800000> : vector<8xf32>
      %57 = vector.multi_reduction <maximumf>, %56, %cst_28 [1] : vector<8x128xf32> to vector<8xf32>
      %58 = vector.shape_cast %57 : vector<8xf32> to vector<8x1xf32>
      %59 = vector.broadcast %58 : vector<8x1xf32> to vector<8x128xf32>
      %60 = arith.subf %56, %59 : vector<8x128xf32>
      %61 = math.exp %60 : vector<8x128xf32>
      %cst_29 = arith.constant dense<0.000000e+00> : vector<8xf32>
      %62 = vector.multi_reduction <add>, %61, %cst_29 [1] : vector<8x128xf32> to vector<8xf32>
      %63 = vector.shape_cast %62 : vector<8xf32> to vector<8x1xf32>
      %64 = math.log %63 : vector<8x1xf32>
      %65 = vector.broadcast %64 : vector<8x1xf32> to vector<8x128xf32>
      %66 = arith.subf %60, %65 : vector<8x128xf32>
      %67 = arith.subf %54, %66 : vector<8x128xf32>
      %68 = arith.mulf %51, %67 : vector<8x128xf32>
      %69 = vector.shape_cast %68 : vector<8x128xf32> to vector<1x8x128xf32>
      %cst_30 = arith.constant dense<0.000000e+00> : vector<1xf32>
      %70 = vector.multi_reduction <add>, %69, %cst_30 [1, 2] : vector<1x8x128xf32> to vector<1xf32>
      %71 = vector.shape_cast %70 : vector<1xf32> to vector<1x1x1xf32>
      %72 = vector.extract %71[0, 0, 0] : f32 from vector<1x1x1xf32>
      %cst_31 = arith.constant 4.000000e+00 : f32
      %73 = arith.mulf %72, %cst_31 : f32
      %cst_32 = arith.constant 1.024000e+03 : f32
      %74 = arith.divf %73, %cst_32 : f32
      %cst_33 = arith.constant 5.000000e-01 : f32
      %75 = arith.mulf %40, %cst_33 : f32
      %cst_34 = arith.constant 5.000000e-01 : f32
      %76 = arith.mulf %74, %cst_34 : f32
      %77 = arith.addf %75, %76 : f32
      %c0_35 = arith.constant 0 : index
      %c0_36 = arith.constant 0 : index
      %78 = memref.load %arg7[%c0_35, %c0_36] : memref<1x1xf32, #tpu.memory_space<smem>>
      memref.store %77, %arg7[%c0_35, %c0_36] : memref<1x1xf32, #tpu.memory_space<smem>>
    } else {
    }
    return
  }
  func.func @transform_0(%arg0: i32) -> (i32, i32) {
    %c0_i32 = arith.constant 0 : i32
    %c0_i32_0 = arith.constant 0 : i32
    %c0_i32_1 = arith.constant 0 : i32
    return %c0_i32, %c0_i32_0 : i32, i32
  }
  func.func @transform_1(%arg0: i32) -> (i32, i32) {
    %c0_i32 = arith.constant 0 : i32
    %c0_i32_0 = arith.constant 0 : i32
    %c0_i32_1 = arith.constant 0 : i32
    return %c0_i32, %c0_i32_0 : i32, i32
  }
  func.func @transform_2(%arg0: i32) -> (i32, i32) {
    %c0_i32 = arith.constant 0 : i32
    %c0_i32_0 = arith.constant 0 : i32
    %c0_i32_1 = arith.constant 0 : i32
    return %c0_i32, %c0_i32_0 : i32, i32
  }
  func.func @transform_3(%arg0: i32) -> (i32, i32) {
    %c0_i32 = arith.constant 0 : i32
    %c0_i32_0 = arith.constant 0 : i32
    return %c0_i32, %arg0 : i32, i32
  }
  func.func @transform_4(%arg0: i32) -> (i32, i32) {
    %c0_i32 = arith.constant 0 : i32
    %c0_i32_0 = arith.constant 0 : i32
    return %arg0, %c0_i32 : i32, i32
  }
  func.func @transform_5(%arg0: i32) -> (i32, i32) {
    %c0_i32 = arith.constant 0 : i32
    %c0_i32_0 = arith.constant 0 : i32
    %c0_i32_1 = arith.constant 0 : i32
    return %c0_i32, %c0_i32_0 : i32, i32
  }
  func.func @transform_6(%arg0: i32) -> (i32, i32) {
    %c0_i32 = arith.constant 0 : i32
    %c0_i32_0 = arith.constant 0 : i32
    %c0_i32_1 = arith.constant 0 : i32
    return %c0_i32, %c0_i32_0 : i32, i32
  }
}

</mosaic_0001>

<bundles_post_ra>
// kernel: tpu_custom_call.1
= control target key start
LH: loop header
LB: loop body
LE: loop exit
PB: predicated region body
PF: predicated region fallthrough
CT: control target
= control target key end

     0   :  { %11 = vsyncpa [#allocation4], 0  ;;  %s1477_s0 = inlined_call_operand.vmem [shape: s32[8,1], index: 0, kind: input, shape index: {}]   ;;  %s1478_s1 = inlined_call_operand.vmem [shape: f32[8,128], index: 1, kind: input, shape index: {}]   ;;  %s1479_s2 = inlined_call_operand.hbm [shape: f32[8,128], index: 2, kind: input, shape index: {}]   ;;  %s1480_s3 = inlined_call_operand.hbm [shape: bf16[8,1024], index: 3, kind: input, shape index: {}]   ;;  %s1481_s4 = inlined_call_operand.hbm [shape: bf16[1024,128], index: 4, kind: input, shape index: {}]   ;;  %s1482_s5 = inlined_call_operand.vmem [shape: f32[1,128], index: 5, kind: input, shape index: {}]   ;;  %s1483_s6 = inlined_call_operand.hbm [shape: f32[1,1], index: 6, kind: output, shape index: {}]  }
   0x1   :  { %12 = vsyncpa [#allocation7], 0 }
   0x2   :  { %14 = vsyncpa [#allocation7 + $0x1], 0 }
   0x3   :  { %15 = vsyncpa [#allocation5], 0  ;;  %s1255_s21 = smov 0   ;;  %s1257_s22 = smov 0  }
   0x4   :  { %s1259_s23 = smov 0   ;;  %s1261_s24 = smov 0  }
   0x5 LB: > { %s1276_s25 = sadd.s32 1, %s1209_s24   ;;  %s91_s26 = sadd.s32 1, %s1205_s23  ;;  %s1209_s24 = sphi %s1261_s24, %s1499_s24   ;;  %s1205_s23 = sphi %s1259_s23, %s1498_s23   ;;  %s1201_s22 = sphi %s1257_s22, %s1497_s22   ;;  %s1197_s21 = sphi %s1255_s21, %s1496_s21  }
   0x6   : > { %s88_s27 = ssub.s32 %s1209_s24, %s1276_s25  ;;  %p98_p0 = scmp.ne.s32.totalorder %s1205_s23, %s1201_s22 }
   0x7   : > { %p89_p1 = scmp.eq.s32.totalorder %s88_s27, 0  ;;  %p99_p2 = scmp.eq.s32.totalorder %s1209_s24, 0 }
   0x8   : > { %p981_p3 = scmp.lt.s32.totalorder %s1209_s24, 2  ;;  %s216_s29 = sand.u32 1, %s1209_s24  }
   0x9   : > { %s1286_s28 = scalar_select %p89_p1, %s1205_s23, %s91_s26  }
   0xa   : > { %p100_p4 = por %p99_p2, %p98_p0  ;;  %s218_s30 = sand.u32 1, %s1205_s23  }
   0xb   : > { %s853_s7 = sshll.u32 %s218_s30, 4  ;;  %s907_s8 = sshll.u32 %s1209_s24, 8 }
   0xc   : > { %s1294_s11 = scalar_lea.hbm %s1480_s3, %s907_s8  ;;  %s220_s12 = scalar_lea.vmem [#allocation6], %s853_s7 }
   0xd   : > { %s228_s13 = sshll.u32 %s220_s12, 4  ;;  %p1296_p5 = pnand %p981_p3, %p100_p4  ;;  %s229_s13 = int_to_ptr.vmem [resolvable:$true] %s228_s13 }
   0xe   : > { %s856_s15 = sshll.u32 %s218_s30, 8  ;;  %s1300_s16 = scalar_lea.sflag [#allocation7], %s216_s29 }
   0xf   : > { %s1075_s17 = scalar_lea.hbm %s1294_s11, 256  ;;  %p1077_p7 = pneg %p1296_p5 }
  0x10   : > { %p1076_p6 = scmp.ne.s32.totalorder %s1294_s11, %s1075_s17  ;;  %s1080_s20 = scalar_lea.hbm %s1480_s3, 512 }
  0x11   : > { %p1081_p10 = scmp.lt.s32.totalorder %s1294_s11, %s1480_s3  ;;  %p1082_p11 = scmp.lt.s32.totalorder %s1080_s20, %s1075_s17 }
  0x12   : > { %p1078_p8 = pnand %p1077_p7, %p1076_p6 }
  0x13   : > { %p1083_p12 = por %p1082_p11, %p1081_p10 }
  0x14   : > { %p1079_p9 = pneg %p1078_p8 }
  0x16   : > { %p1084_p13 = pnand %p1083_p12, %p1079_p9 }
  0x18   : > { %1087 = shalt.err (!%p1084_p13)
}
  0x19   : > { %s1088_s29 = scalar_lea.vmem %s229_s13, 256  ;;  %s1211_s30 = smov [#allocation6]  }
  0x1a   : > { %p1089_p0 = scmp.ne.s32.totalorder %s229_s13, %s1088_s29  ;;  %s1093_s7 = sshll.u32 %s1211_s30, 4  ;;  %s1094_s7 = int_to_ptr.vmem [resolvable:$false] %s1093_s7 }
  0x1b   : > { %s1095_s8 = scalar_lea.vmem %s1094_s7, 512  ;;  %p1096_p3 = scmp.lt.s32.totalorder %s229_s13, %s1094_s7 }
  0x1c   : > { %p1091_p1 = pnand %p1089_p0, %p1077_p7  ;;  %p1097_p4 = scmp.lt.s32.totalorder %s1095_s8, %s1088_s29 }
  0x1e   : > { %p1092_p2 = pneg %p1091_p1  ;;  %p1098_p6 = por %p1097_p4, %p1096_p3 }
  0x20   : > { %p1099_p8 = pnand %p1098_p6, %p1092_p2 }
  0x22   : > { %1102 = shalt.err (!%p1099_p8)
}
  0x23   : > { %976 = dma.hbm_to_vmem [thread:$0]  (!%p1296_p5), %s1294_s11, 256, %s229_s13, %s1300_s16  }
  0x24   : > { %s239_s9 = scalar_lea.vmem [#allocation8], %s856_s15  ;;  %s1324_s12 = sadd.s32 4294967295, %s1209_s24  }
  0x25   : > { %s246_s10 = sshll.u32 %s239_s9, 4  ;;  %p104_p9 = scmp.ne.s32.totalorder %s1201_s22, %s1197_s21  ;;  %s1338_s10 = int_to_ptr.vmem [resolvable:$true] %s246_s10 }
  0x26   : > { %p1484_p10 = scmp.eq.s32.totalorder %s1324_s12, 0  ;;  %p850_p11 = scmp.ge.s32.totalorder %s1209_s24, 1 }
  0x27   : > { %p183_p12 = scmp.lt.s32.totalorder %s1209_s24, 3  ;;  %s1212_s13 = smov [#allocation3]  }
  0x28   : > { %p1334_p0 = por %p1484_p10, %p104_p9  ;;  %s202_s15 = sshll.u32 %s1212_s13, 4  ;;  %s1352_s15 = int_to_ptr.vmem [resolvable:$true] %s202_s15 }
  0x29   : > { %p1340_p1 = pnand %p850_p11, %p183_p12  ;;  %s908_s21 = sshll.u32 %s1209_s24, 12 }
  0x2a   : > { %s1488_s17 = scalar_select %p1334_p0, 1, 0 }
  0x2b   : > { %s1489_s11 = scalar_select %p1340_p1, 1, 0 }
  0x2c   : > { %p969_p2 = pneg %p1340_p1  ;;  %s1350_s20 = scalar_lea.hbm %s1481_s4, %s908_s21 }
  0x2d   : > { %s1103_s27 = scalar_lea.hbm %s1350_s20, 4096  ;;  %s1108_s30 = scalar_lea.hbm %s1481_s4, 8192 }
  0x2e   : > { %p1356_p3 = pnand %p969_p2, %p1484_p10  ;;  %p1104_p4 = scmp.ne.s32.totalorder %s1350_s20, %s1103_s27 }
  0x2f   : > { %p1109_p9 = scmp.lt.s32.totalorder %s1350_s20, %s1481_s4  ;;  %p1110_p11 = scmp.lt.s32.totalorder %s1108_s30, %s1103_s27 }
  0x30   : > { %p1106_p6 = pnand %p1104_p4, %p1077_p7 }
  0x31   : > { %p1111_p12 = por %p1110_p11, %p1109_p9 }
  0x32   : > { %p1107_p8 = pneg %p1106_p6 }
  0x34   : > { %p1112_p2 = pnand %p1111_p12, %p1107_p8 }
  0x36   : > { %1115 = shalt.err (!%p1112_p2)
}
  0x37   : > { %s1116_s9 = scalar_lea.vmem %s1338_s10, 4096  ;;  %s1213_s13 = smov [#allocation8]  }
  0x38   : > { %p1117_p13 = scmp.ne.s32.totalorder %s1338_s10, %s1116_s9  ;;  %s1121_s21 = sshll.u32 %s1213_s13, 4  ;;  %s1122_s21 = int_to_ptr.vmem [resolvable:$false] %s1121_s21 }
  0x39   : > { %s1123_s18 = scalar_lea.vmem %s1122_s21, 8192  ;;  %p1124_p10 = scmp.lt.s32.totalorder %s1338_s10, %s1122_s21 }
  0x3a   : > { %p1119_p4 = pnand %p1117_p13, %p1077_p7  ;;  %p1125_p0 = scmp.lt.s32.totalorder %s1123_s18, %s1116_s9 }
  0x3c   : > { %p1120_p6 = pneg %p1119_p4  ;;  %p1126_p1 = por %p1125_p0, %p1124_p10 }
  0x3e   : > { %p1127_p9 = pnand %p1126_p1, %p1120_p6 }
  0x40   : > { %1130 = shalt.err (!%p1127_p9)
}
  0x41   : > { %s1214_s19 = smov 64   ;;  %s1215_s27 = smov 4  }
  0x42   : > { %979 = dma.hbm_to_vmem [thread:$0]  (!%p1296_p5), %s1350_s20, 4096, %s1338_s10, %s1300_s16, %s1214_s19, %s1214_s19, %s1215_s27  }
  0x43   : > { %p1133_p7 = pneg %p1356_p3  ;;  %s1142_s24 = scalar_lea.vmem %s1352_s15, 128 }
  0x44   : > { %p1143_p13 = scmp.ne.s32.totalorder %s1352_s15, %s1142_s24  ;;  %p1150_p0 = scmp.lt.s32.totalorder %s1352_s15, %s1352_s15 }
  0x45   : > { %p1151_p1 = scmp.lt.s32.totalorder %s1142_s24, %s1142_s24 }
  0x46   : > { %p1145_p8 = pnand %p1143_p13, %p1133_p7 }
  0x47   : > { %p1152_p11 = por %p1151_p1, %p1150_p0 }
  0x48   : > { %p1146_p10 = pneg %p1145_p8 }
  0x4a   : > { %p1153_p12 = pnand %p1152_p11, %p1146_p10 }
  0x4c   : > { %1156 = shalt.err (!%p1153_p12)
}
  0x4d   : > { %972 = dma.hbm_to_vmem [thread:$0]  (!%p1356_p3), %s1479_s2, 128, %s1352_s15, [#allocation4]  }
  0x4e   : > { %p1491_p5 = scmp.ne.s32.totalorder %s1489_s11, 0 }
  0x4f   : > { %p1492_p2 = scmp.eq.s32.totalorder (!%p1491_p5), %s1324_s12, 0 }
  0x50   : > { %258 = sbr.rel (%p1491_p5) target bundleno = 885 (0x375), region = 44 }
  0x55   : > { %1184 = dma.done.wait (%p1492_p2), [#allocation4], 128   ;;  %p1493_p4 = pmov %p1492_p2 }
  0x56   : > { %s264_s14 = sand.u32 1, %s1324_s12   ;;  %s266_s16 = sand.u32 1, %s1201_s22  }
  0x57   : > { %1186 = vsyncadd (%p1493_p4), [#allocation4], 4294967168  ;;  %s1403_s10 = sshll.u32 %s266_s16, 4  ;;  %s265_s20 = scalar_lea.sflag [#allocation7], %s264_s14 }
  0x58   : > { %s268_s26 = scalar_lea.vmem [#allocation6], %s1403_s10  ;;  %p1494_p3 = scmp.ne.s32.totalorder %s1488_s17, 0 }
  0x5a   : > { %1188 = dma.done.wait (%p1494_p3), %s265_s20, 4352  }
  0x5b   : > { %1190 = vsyncadd (%p1494_p3), %s265_s20, 4294962944  ;;  %s862_s11 = sshll.u32 %s266_s16, 8  ;;  %p1495_p6 = scmp.ne.s32.totalorder %s1324_s12, 0 }
  0x5c   : > { %s1410_s15 = scalar_lea.vmem [#allocation8], %s862_s11 }
  0x5d   : > { %312 = sbr.rel (%p1495_p6) target bundleno = 100 (0x64), region = 60 }
  0x62   : > { %v1216_v0 = vmov 0.0  }
  0x63   : > { %313 = vst [vmem:[#allocation2] sm:$0xff] %v1216_v0 }
  0x64 PF: > { %v1024_v1 = vld [vmem:[%s1410_s15 + $0x78] sm:$0xff]   ;;  %v1028_v5 = vld [vmem:[%s1410_s15 + $0x70] sm:$0xff]   ;;  %v1032_v9 = vld [vmem:[%s1410_s15 + $0x68] sm:$0xff]   ;;  %p900_p9 = scmp.ne.s32.totalorder %s1324_s12, 1 }
  0x65   : > { %v1025_v2 = vld [vmem:[%s1410_s15 + $0xf8] sm:$0xff]   ;;  %909 = vmatprep.subr.bf16.mxu0 %v1024_v1  ;;  %v1029_v6 = vld [vmem:[%s1410_s15 + $0xf0] sm:$0xff]   ;;  %v1033_v10 = vld [vmem:[%s1410_s15 + $0xe8] sm:$0xff]  }
  0x66   : > { %v1026_v3 = vld [vmem:[%s1410_s15 + $0x38] sm:$0xff]   ;;  %931 = vmatprep.subr.bf16.mxu1 %v1025_v2  ;;  %v1030_v7 = vld [vmem:[%s1410_s15 + $0x30] sm:$0xff]   ;;  %v1034_v11 = vld [vmem:[%s1410_s15 + $0x28] sm:$0xff]  }
  0x67   : > { %v1027_v4 = vld [vmem:[%s1410_s15 + $0xb8] sm:$0xff]   ;;  %910 = vmatpush3.bf16.msra.mxu0 %v1026_v3  ;;  %v1031_v8 = vld [vmem:[%s1410_s15 + $0xb0] sm:$0xff]   ;;  %v1035_v12 = vld [vmem:[%s1410_s15 + $0xa8] sm:$0xff]  }
  0x68   : > { %932 = vmatpush3.bf16.msra.mxu1 %v1027_v4  ;;  %911 = vmatprep.subr.bf16.mxu0 %v1028_v5  ;;  %v1036_v13 = vld [vmem:[%s1410_s15 + $0x60] sm:$0xff]   ;;  %v1040_v17 = vld [vmem:[%s1410_s15 + $0x58] sm:$0xff]   ;;  %v1044_v21 = vld [vmem:[%s1410_s15 + $0x50] sm:$0xff]  }
  0x69   : > { %933 = vmatprep.subr.bf16.mxu1 %v1029_v6  ;;  %v1037_v14 = vld [vmem:[%s1410_s15 + $0xe0] sm:$0xff]   ;;  %v1041_v18 = vld [vmem:[%s1410_s15 + $0xd8] sm:$0xff]   ;;  %v1045_v22 = vld [vmem:[%s1410_s15 + $0xd0] sm:$0xff]  }
  0x6a   : > { %v1038_v15 = vld [vmem:[%s1410_s15 + $0x20] sm:$0xff]   ;;  %v1042_v19 = vld [vmem:[%s1410_s15 + $0x18] sm:$0xff]   ;;  %v1046_v23 = vld [vmem:[%s1410_s15 + $0x10] sm:$0xff]  }
  0x6b   : > { %912 = vmatpush3.bf16.msra.mxu0 %v1030_v7  ;;  %v1039_v16 = vld [vmem:[%s1410_s15 + $0xa0] sm:$0xff]   ;;  %v1043_v20 = vld [vmem:[%s1410_s15 + $0x98] sm:$0xff]   ;;  %v1047_v24 = vld [vmem:[%s1410_s15 + $0x90] sm:$0xff]  }
  0x6c   : > { %934 = vmatpush3.bf16.msra.mxu1 %v1031_v8  ;;  %913 = vmatprep.subr.bf16.mxu0 %v1032_v9  ;;  %v1048_v25 = vld [vmem:[%s1410_s15 + $0x48] sm:$0xff]   ;;  %v1052_v29 = vld [vmem:[%s1410_s15 + $0x40] sm:$0xff]   ;;  %v314_v45 = vld [vmem:[#allocation2] sm:$0xff] }
  0x6d   : > { %935 = vmatprep.subr.bf16.mxu1 %v1033_v10  ;;  %v1049_v26 = vld [vmem:[%s1410_s15 + $0xc8] sm:$0xff]   ;;  %v1053_v30 = vld [vmem:[%s1410_s15 + $0xc0] sm:$0xff]  }
  0x6e   : > { %v1050_v27 = vld [vmem:[%s1410_s15 + $0x8] sm:$0xff]   ;;  %v1054_v31 = vld [vmem:[%s1410_s15] sm:$0xff]  }
  0x6f   : > { %914 = vmatpush3.bf16.msra.mxu0 %v1034_v11  ;;  %v1051_v28 = vld [vmem:[%s1410_s15 + $0x88] sm:$0xff]   ;;  %v1055_v32 = vld [vmem:[%s1410_s15 + $0x80] sm:$0xff]  }
  0x70   : > { %936 = vmatpush3.bf16.msra.mxu1 %v1035_v12  ;;  %915 = vmatprep.subr.bf16.mxu0 %v1036_v13  ;;  %v315_v33 = vld [vmem:[%s268_s26] sm:$0xff]  ;;  %v316_v34 = vld [vmem:[%s268_s26 + $0x8] sm:$0xff] }
  0x71   : > { %937 = vmatprep.subr.bf16.mxu1 %v1037_v14  ;;  %v864_v35 = vcombine.low %v315_v33, %v315_v33  ;;  %v865_v36 = vcombine.high %v315_v33, %v315_v33  ;;  %v866_v37 = vcombine.low %v316_v34, %v316_v34  ;;  %v867_v38 = vcombine.high %v316_v34, %v316_v34 }
  0x73   : > { %916 = vmatpush3.bf16.msra.mxu0 %v1038_v15  ;;  %619 = vmatprep.mubr.bf16.mxu0 %v865_v36 }
  0x74   : > { %938 = vmatpush3.bf16.msra.mxu1 %v1039_v16  ;;  %917 = vmatprep.subr.bf16.mxu0 %v1040_v17 }
  0x75   : > { %939 = vmatprep.subr.bf16.mxu1 %v1041_v18  ;;  %659 = vmatprep.mubr.bf16.mxu1 %v867_v38 }
  0x77   : > { %918 = vmatpush3.bf16.msra.mxu0 %v1042_v19 }
  0x78   : > { %940 = vmatpush3.bf16.msra.mxu1 %v1043_v20  ;;  %919 = vmatprep.subr.bf16.mxu0 %v1044_v21 }
  0x79   : > { %941 = vmatprep.subr.bf16.mxu1 %v1045_v22 }
  0x7b   : > { %920 = vmatpush3.bf16.msra.mxu0 %v1046_v23 }
  0x7c   : > { %942 = vmatpush3.bf16.msra.mxu1 %v1047_v24  ;;  %921 = vmatprep.subr.bf16.mxu0 %v1048_v25 }
  0x7d   : > { %943 = vmatprep.subr.bf16.mxu1 %v1049_v26 }
  0x7f   : > { %922 = vmatpush3.bf16.msra.mxu0 %v1050_v27 }
  0x80   : > { %944 = vmatpush3.bf16.msra.mxu1 %v1051_v28  ;;  %923 = vmatprep.subr.bf16.mxu0 %v1052_v29 }
  0x81   : > { %945 = vmatprep.subr.bf16.mxu1 %v1053_v30 }
  0x83   : > { %924 = vmatpush3.bf16.msra.mxu0 %v1054_v31 }
  0x84   : > { %946 = vmatpush3.bf16.msra.mxu1 %v1055_v32 }
  0x86   : > { %620 = vmatmul.mubr.bf16.vlgmr.msra.gmra.mxu0 %v864_v35 }
  0x87   : > { %660 = vmatmul.mubr.bf16.vlgmr.msra.gmra.mxu1 %v866_v37 }
 0x146   : > { %v925_v39 = vpop.f32.mrf.mxu0 }
 0x147   : > { %v947_v40 = vpop.f32.mrf.mxu1 }
 0x148   : > { %v926_v41 = vpop.f32.mrf.mxu0 }
 0x149   : > { %v948_v42 = vpop.f32.mrf.mxu1  ;;  %v927_v43 = vadd.f32 %v926_v41, %v925_v39 }
 0x14a   : > { %v949_v44 = vadd.f32 %v948_v42, %v947_v40  ;;  %v928_v46 = vpop.f32.mrf.mxu0 }
 0x14b   : > { %v950_v47 = vpop.f32.mrf.mxu1 }
 0x14c   : > { %v662_v48 = vadd.f32 %v949_v44, %v927_v43  ;;  %v929_v49 = vpop.f32.mrf.mxu0  ;;  %672 = sbr.rel (%p900_p9) target bundleno = 879 (0x36f), region = 64 }
 0x14d   : > { %v951_v50 = vpop.f32.mrf.mxu1 }
 0x14e   : > { %v667_v51 = vadd.f32 %v662_v48, %v314_v45 }
 0x150   : > { %668 = vst [vmem:[#allocation2] sm:$0xff] %v667_v51 }
 0x151   : > { %v901_v53 = vld [vmem:[%s1482_s5] ss:$0 sm:$0xff]  ;;  %v683_v56 = vld [vmem:[#allocation3] sm:$0xff]  ;;  %v1217_v59 = vmov 0   ;;  %v685_v12 = vlaneseq  ;;  %v1218_v21 = vmov 0.0  }
 0x152   : > { %v682_v54 = vld [vmem:[%s1478_s1] sm:$0xff]  ;;  %v730_v58 = vmul.f32 0.5, %v683_v56  ;;  %1060 = vset.pattern.permute.xlu0 %v1217_v59 }
 0x153   : > { %693 = vmax.xlane.f32.xlu1 %v682_v54  ;;  %v684_v8 = vld [vmem:[%s1477_s0] sm:$0xff]  ;;  %v686_v13 = vand.u32 127, %v685_v12 }
 0x157   : > { %v673_v52 = vld [vmem:[#allocation2] sm:$0xff] }
 0x158   : > { %v681_v55 = vadd.f32 %v901_v53, %v673_v52 }
 0x15a   : > { %v717_v57 = vmul.f32 0.5, %v681_v55 }
 0x15c   : > { %718 = vmax.xlane.f32.xlu0 %v717_v57 }
 0x160   : > { %731 = vmax.xlane.f32.xlu0 %v730_v58 }
 0x1dc   : > { %v694_v60 = vpop.xlane.xlu1 %693 }
 0x1dd   : > { %v695_v61 = vsub.f32 %v682_v54, %v694_v60 }
 0x1df   : > { %v696_v1 = vmul.f32 1.442695, %v695_v61 }
 0x1e5   : > { %v719_v62 = vpop.xlane.xlu0 %718 }
 0x1e6   : > { %v720_v63 = vsub.f32 %v717_v57, %v719_v62 }
 0x1e8   : > { %v721_v0 = vmul.f32 1.442695, %v720_v63 }
 0x1e9   : > { %v732_v2 = vpop.xlane.xlu0 %731 }
 0x1ea   : > { %1061 = vpow2.f32 %v721_v0  ;;  %v733_v3 = vsub.f32 %v730_v58, %v732_v2 }
 0x1eb   : > { %1063 = vpow2.f32 %v696_v1 }
 0x1ec   : > { %v734_v4 = vmul.f32 1.442695, %v733_v3 }
 0x1ee   : > { %1065 = vpow2.f32 %v734_v4 }
 0x1f7   : > { %v1062_v5 = vpop.eup %1061 }
 0x1f8   : > { %723 = vadd.xlane.f32.xlu1 %v1062_v5  ;;  %v1064_v6 = vpop.eup %1063 }
 0x1fb   : > { %v1066_v7 = vpop.eup %1065 }
 0x1fc   : > { %698 = vadd.xlane.f32.xlu1 %v1064_v6  ;;  %736 = vadd.xlane.f32.xlu0 %v1066_v7 }
 0x212   : > { %688 = vperm.xlu0 %1060, %v684_v8  }
 0x281   : > { %v724_v9 = vpop.xlane.xlu1 %723 }
 0x282   : > { %1067 = vlog2.f32 %v724_v9 }
 0x285   : > { %v699_v10 = vpop.xlane.xlu1 %698  ;;  %v737_v11 = vpop.xlane.xlu0 %736 }
 0x286   : > { %1069 = vlog2.f32 %v699_v10 }
 0x287   : > { %1071 = vlog2.f32 %v737_v11 }
 0x288   : > { %1073 = vrcp.f32 %v724_v9 }
 0x28d   : > { %v689_v14 = vpop.permute.xlu0 %688 }
 0x28e   : > { %vm690_vm0 = vcmp.eq.s32.totalorder %v686_v13, %v689_v14 }
 0x28f   : > { %v1068_v15 = vpop.eup %1067  ;;  %v902_v22 = vsel %vm690_vm0, 1.0, %v1218_v21 }
 0x290   : > { %v728_v17 = vmul.f32 0.6931472, %v1068_v15 }
 0x292   : > { %v729_v25 = vsub.f32 %v720_v63, %v728_v17 }
 0x293   : > { %v1070_v16 = vpop.eup %1069 }
 0x294   : > { %v1072_v18 = vpop.eup %1071  ;;  %v701_v19 = vmul.f32 0.6931472, %v1070_v16 }
 0x295   : > { %v739_v20 = vmul.f32 0.6931472, %v1072_v18  ;;  %v1074_v24 = vpop.eup %1073 }
 0x296   : > { %v702_v23 = vsub.f32 %v695_v61, %v701_v19  ;;  %v726_v29 = vmul.f32 %v1074_v24, %v1062_v5 }
 0x297   : > { %v740_v26 = vsub.f32 %v733_v3, %v739_v20 }
 0x298   : > { %v703_v27 = vmul.f32 %v902_v22, %v702_v23 }
 0x299   : > { %v741_v28 = vsub.f32 %v729_v25, %v740_v26 }
 0x29a   : > { %704 = vadd.xlane.f32.xlu1 %v703_v27 }
 0x29b   : > { %v742_v30 = vmul.f32 %v741_v28, %v726_v29 }
 0x29e   : > { %743 = vadd.xlane.f32.xlu1 %v742_v30 }
 0x323   : > { %v705_v31 = vpop.xlane.xlu1 %704 }
 0x324   : > { %v706_v32 = vrot.slane %v705_v31, 4 }
 0x326   : > { %v707_v33 = vadd.f32 %v706_v32, %v705_v31 }
 0x327   : > { %v744_v34 = vpop.xlane.xlu1 %743 }
 0x328   : > { %v708_v35 = vrot.slane %v707_v33, 2  ;;  %v745_v36 = vrot.slane %v744_v34, 4 }
 0x32a   : > { %v746_v37 = vadd.f32 %v745_v36, %v744_v34  ;;  %v709_v38 = vadd.f32 %v708_v35, %v707_v33 }
 0x32c   : > { %v747_v39 = vrot.slane %v746_v37, 2  ;;  %v710_v40 = vrot.slane %v709_v38, 1 }
 0x32e   : > { %v748_v41 = vadd.f32 %v747_v39, %v746_v37  ;;  %v711_v42 = vadd.f32 %v710_v40, %v709_v38 }
 0x330   : > { %953 = vpush %v711_v42  ;;  %v749_v43 = vrot.slane %v748_v41, 1 }
 0x332   : > { %v750_v44 = vadd.f32 %v749_v43, %v748_v41 }
 0x334   : > { %955 = vpush %v750_v44 }
 0x361   : > { %s954_s18 = spop %953 }
 0x362   : > { %s713_s19 = ssub.f32 0.0, %s954_s18 }
 0x364   : > { %s716_s24 = smul.f32 0.125, %s713_s19 }
 0x365   : > { %s956_s27 = spop %955 }
 0x366   : > { %s752_s29 = smul.f32 4.0, %s956_s27 }
 0x367   : > { %s756_s14 = smul.f32 0.5, %s716_s24 }
 0x368   : > { %s755_s30 = smul.f32 0.0009765625, %s752_s29 }
 0x36a   : > { %s757_s16 = smul.f32 0.5, %s755_s30 }
 0x36c   : > { %s758_s10 = sadd.f32 %s757_s16, %s756_s14 }
 0x36e   : > { %760 = sst [smem:[#allocation9]] %s758_s10 }
 0x36f PF: > { %p983_p7 = scmp.eq.s32.totalorder %s1324_s12, 1  ;;  %s1219_s20 = smov [#allocation9]  }
 0x371   : > { %966 = dma.smem_to_hbm (%p983_p7), %s1219_s20, 16, %s1483_s6, [#allocation5]  }
 0x372   : > { %1192 = dma.done.wait (%p983_p7), [#allocation5], 16  }
 0x373   : > { %1194 = vsyncadd (%p983_p7), [#allocation5], 4294967280 }
 0x374   : > { %774 = sfence }
 0x375 PF: > { %p18_p13 = scmp.ge.s32.totalorder %s1276_s25, 4   ;;  %s1496_s21 = smov %s1201_s22 }
 0x376   : > { %s1497_s22 = smov %s1205_s23  ;;  %s1498_s23 = smov %s1286_s28 }
 0x377   : > { %s1499_s24 = smov %s1276_s25  ;;  %20 = sbr.rel (!%p18_p13) target bundleno = 5 (0x5), region = 106 }
 0x37c   :  { %780 = vsyncpa [#allocation4], 1 }
 0x37d   :  { %782 = vsyncpa [#allocation4 + $0x1], 1 }
 0x37e   :  { %783 = vsyncpa [#allocation7], 1 }
 0x37f   :  { %785 = vsyncpa [#allocation7 + $0x1], 1 }
 0x380   :  { %786 = vsyncpa [#allocation5], 1 }
 0x381   :  { %788 = vsyncpa [#allocation5 + $0x1], 1 }

</bundles_post_ra>
